<compile_context>
chip_gen: v7x
topology: tpu7x:2x2x1
jax: 0.10.0
libtpu: 0.0.40
codegen_flags: <defaults>
</compile_context>

<pallas_src>
import jax
import jax.numpy as jnp
from jax.experimental import pallas as pl
from jax.experimental.pallas import tpu as pltpu


def _softmax_kernel(x_ref, o_ref):
    # Numerically-stable softmax over the last axis, computed in f32.
    x = x_ref[...].astype(jnp.float32)
    m = jnp.max(x, axis=-1, keepdims=True)
    e = jnp.exp(x - m)
    denom = jnp.sum(e, axis=-1, keepdims=True)
    # Exact reciprocal: keeps f32 parity with the reference (approx=True would
    # be ~free on the EUP but introduces ~1e-3 relative error).
    o_ref[...] = (e * pl.reciprocal(denom, approx=False)).astype(o_ref.dtype)


def softmax_pallas(x, *, block_rows=None):
    """Softmax over the last axis of a 2-D array (matches torch.nn.Softmax() on 2-D input)."""
    assert x.ndim == 2, "kernel expects (batch, features)"
    n, f = x.shape

    # ---- choose the row tile ------------------------------------------------
    if block_rows is None:
        tile_budget_bytes = 2 * 1024 * 1024          # ~2 MiB f32 per input tile
        block_rows = max(tile_budget_bytes // (f * 4), 8)
        block_rows = min(block_rows, 512)             # sweet spot from tile sweeps
    block_rows = min(block_rows, n)
    block_rows = (block_rows // 8) * 8                # f32 sublane multiple

    if block_rows >= 8:
        # Tiled, pipelined path.  Feature block dim == full f (always legal);
        # row block dim is a multiple of 8.  Partial last block is handled by
        # Pallas (masked writes), so pl.cdiv is safe for any n.
        grid = (pl.cdiv(n, block_rows),)
        in_spec = pl.BlockSpec((block_rows, f), lambda i: (i, 0))
        out_spec = pl.BlockSpec((block_rows, f), lambda i: (i, 0))
        dim_sem = ("parallel",)
    else:
        # Tiny / irregular batch (n < 8): single full-array block.
        grid = (1,)
        in_spec = pl.BlockSpec((n, f), lambda i: (0, 0))
        out_spec = pl.BlockSpec((n, f), lambda i: (0, 0))
        dim_sem = ("arbitrary",)

    return pl.pallas_call(
        _softmax_kernel,
        out_shape=jax.ShapeDtypeStruct((n, f), x.dtype),
        grid_spec=pltpu.PrefetchScalarGridSpec(
            num_scalar_prefetch=0,
            grid=grid,
            in_specs=[in_spec],
            out_specs=out_spec,
        ),
        compiler_params=pltpu.CompilerParams(
            dimension_semantics=dim_sem,
        ),
    )(x)


if __name__ == "__main__":
    key = jax.random.PRNGKey(0)

    # Small but lane-dense input (f = 128) exercising the tiled path.
    x = jax.random.normal(key, (16, 128), dtype=jnp.float32)
    ref = jax.nn.softmax(x, axis=-1)

    # Default tiling (single 16-row block here).
    out = softmax_pallas(x)
    jax.block_until_ready(out)
    assert jnp.allclose(out, ref, atol=1e-6, rtol=1e-6)

    # Force a multi-step grid (two 8-row blocks) to exercise the pipelined path.
    out_tiled = softmax_pallas(x, block_rows=8)
    jax.block_until_ready(out_tiled)
    assert jnp.allclose(out_tiled, ref, atol=1e-6, rtol=1e-6)

    # Literal module example input: ones(2, 2) -> all 0.5 (full-block fallback).
    x_ones = jnp.ones((2, 2), dtype=jnp.float32)
    out_ones = softmax_pallas(x_ones)
    jax.block_until_ready(out_ones)
    assert jnp.allclose(out_ones, 0.5 * jnp.ones((2, 2)), atol=1e-6)

    print("KERNEL_OK")
</pallas_src>

<mosaic_0001>
module attributes {stable_mosaic.version = 11 : i64} {
  func.func @_softmax_kernel(%arg0: i32, %arg1: memref<16x128xf32, #tpu.memory_space<vmem>>, %arg2: memref<16x128xf32, #tpu.memory_space<vmem>>) attributes {dimension_semantics = [#tpu.dimension_semantics<parallel>], iteration_bounds = array<i64: 1>, scalar_prefetch = 0 : i64, scratch_operands = 0 : i64, tpu.core_type = #tpu.core_type<tc>, window_params = [{transform_indices = @transform_0, window_bounds = array<i64: 16, 128>}, {transform_indices = @transform_1, window_bounds = array<i64: 16, 128>}]} {
    %c0 = arith.constant 0 : index
    %c0_0 = arith.constant 0 : index
    %0 = vector.load %arg1[%c0, %c0_0] : memref<16x128xf32, #tpu.memory_space<vmem>>, vector<16x128xf32>
    %cst = arith.constant dense<0xFF800000> : vector<16xf32>
    %1 = vector.multi_reduction <maximumf>, %0, %cst [1] : vector<16x128xf32> to vector<16xf32>
    %2 = vector.shape_cast %1 : vector<16xf32> to vector<16x1xf32>
    %3 = vector.broadcast %2 : vector<16x1xf32> to vector<16x128xf32>
    %4 = arith.subf %0, %3 : vector<16x128xf32>
    %5 = math.exp %4 : vector<16x128xf32>
    %cst_1 = arith.constant dense<0.000000e+00> : vector<16xf32>
    %6 = vector.multi_reduction <add>, %5, %cst_1 [1] : vector<16x128xf32> to vector<16xf32>
    %7 = vector.shape_cast %6 : vector<16xf32> to vector<16x1xf32>
    %8 = tpu.reciprocal %7 : vector<16x1xf32> -> vector<16x1xf32>
    %9 = vector.broadcast %8 : vector<16x1xf32> to vector<16x128xf32>
    %10 = arith.mulf %5, %9 : vector<16x128xf32>
    %c0_2 = arith.constant 0 : index
    %c0_3 = arith.constant 0 : index
    %11 = vector.load %arg2[%c0_2, %c0_3] : memref<16x128xf32, #tpu.memory_space<vmem>>, vector<16x128xf32>
    tpu.vector_store %arg2[%c0_2, %c0_3], %10 {strides = array<i32>} : memref<16x128xf32, #tpu.memory_space<vmem>>, vector<16x128xf32>,
    return
  }
  func.func @transform_0(%arg0: i32) -> (i32, i32) {
    %c0_i32 = arith.constant 0 : i32
    %c0_i32_0 = arith.constant 0 : i32
    return %arg0, %c0_i32 : i32, i32
  }
  func.func @transform_1(%arg0: i32) -> (i32, i32) {
    %c0_i32 = arith.constant 0 : i32
    %c0_i32_0 = arith.constant 0 : i32
    return %arg0, %c0_i32 : i32, i32
  }
}

</mosaic_0001>

<bundles_post_ra>
// kernel: tpu_custom_call.1
= control target key start
LH: loop header
LB: loop body
LE: loop exit
PB: predicated region body
PF: predicated region fallthrough
CT: control target
= control target key end

     0   :  { %6 = vsyncpa [#allocation3], 0  ;;  %s166_s0 = inlined_call_operand.hbm [shape: f32[16,128], index: 0, kind: input, shape index: {}]   ;;  %s167_s1 = inlined_call_operand.hbm [shape: f32[16,128], index: 1, kind: output, shape index: {}]  }
   0x1   :  { %7 = vsyncpa [#allocation4], 0  ;;  %s122_s6 = smov [#allocation2]   ;;  %s74_s10 = scalar_lea.hbm %s166_s0, 256 }
   0x2   :  { %s13_s7 = sshll.u32 %s122_s6, 4  ;;  %p75_p0 = scmp.ne.s32.totalorder %s166_s0, %s74_s10  ;;  %s14_s7 = int_to_ptr.vmem [resolvable:$true] %s13_s7 }
   0x3   :  { %p78_p1 = scmp.lt.u32.totalorder %s74_s10, %s166_s0 }
   0x5   :  { %p80_p2 = pnand %p78_p1, %p75_p0 }
   0x7   :  { %83 = shalt.err (!%p80_p2)
}
   0x8   :  { %s84_s15 = scalar_lea.vmem %s14_s7, 256  ;;  %p89_p4 = scmp.lt.s32.totalorder %s14_s7, %s14_s7 }
   0x9   :  { %p85_p3 = scmp.ne.s32.totalorder %s14_s7, %s84_s15  ;;  %p90_p5 = scmp.lt.s32.totalorder %s84_s15, %s84_s15 }
   0xb   :  { %p91_p6 = por %p90_p5, %p89_p4 }
   0xd   :  { %p92_p7 = pnand %p91_p6, %p85_p3 }
   0xf   :  { %95 = shalt.err (!%p92_p7)
}
  0x10   :  { %s123_s16 = smov 128   ;;  %s124_s17 = smov 8  }
  0x11   :  { %19 = dma.hbm_to_vmem [thread:$0]  %s166_s0, 256, %s14_s7, [#allocation3], %s123_s16, %s123_s16, %s124_s17  }
  0x12   :  { %118 = dma.done.wait [#allocation3], 256  }
  0x13   :  { %119 = vsyncadd [#allocation3], 4294967040  ;;  %v23_v0 = vld [vmem:[#allocation2] sm:$0xff]  ;;  %v24_v1 = vld [vmem:[#allocation2 + $0x8] sm:$0xff]  ;;  %s125_s0 = smov [#allocation5]  }
  0x14   :  { %25 = vmax.xlane.f32.xlu0 %v23_v0  ;;  %s50_s20 = sshll.u32 %s125_s0, 4  ;;  %s51_s20 = int_to_ptr.vmem [resolvable:$true] %s50_s20 }
  0x15   :  { %s96_s21 = scalar_lea.vmem %s51_s20, 256  ;;  %p101_p9 = scmp.lt.s32.totalorder %s51_s20, %s51_s20 }
  0x16   :  { %p97_p8 = scmp.ne.s32.totalorder %s51_s20, %s96_s21  ;;  %p102_p10 = scmp.lt.s32.totalorder %s96_s21, %s96_s21 }
  0x18   :  { %27 = vmax.xlane.f32.xlu0 %v24_v1  ;;  %p103_p11 = por %p102_p10, %p101_p9 }
  0x1a   :  { %p104_p12 = pnand %p103_p11, %p97_p8 }
  0xa1   :  { %v26_v2 = vpop.xlane.xlu0 %25 }
  0xa2   :  { %v29_v3 = vsub.f32 %v23_v0, %v26_v2 }
  0xa4   :  { %v31_v4 = vmul.f32 1.442695, %v29_v3 }
  0xa5   :  { %v28_v5 = vpop.xlane.xlu0 %27 }
  0xa6   :  { %66 = vpow2.f32 %v31_v4  ;;  %v30_v6 = vsub.f32 %v24_v1, %v28_v5 }
  0xa8   :  { %v33_v7 = vmul.f32 1.442695, %v30_v6 }
  0xaa   :  { %68 = vpow2.f32 %v33_v7 }
  0xb0   :  { %v67_v8 = vpop.eup %66 }
  0xb1   :  { %35 = vadd.xlane.f32.xlu1 %v67_v8 }
  0xb4   :  { %v69_v9 = vpop.eup %68 }
  0xb5   :  { %37 = vadd.xlane.f32.xlu1 %v69_v9 }
 0x13e   :  { %v36_v10 = vpop.xlane.xlu1 %35 }
 0x13f   :  { %70 = vrcp.f32 %v36_v10 }
 0x142   :  { %v38_v11 = vpop.xlane.xlu1 %37 }
 0x143   :  { %72 = vrcp.f32 %v38_v11 }
 0x149   :  { %v71_v12 = vpop.eup %70 }
 0x14a   :  { %v41_v13 = vmul.f32 %v71_v12, %v67_v8 }
 0x14c   :  { %43 = vst [vmem:[#allocation5] sm:$0xff] %v41_v13 }
 0x14d   :  { %v73_v14 = vpop.eup %72 }
 0x14e   :  { %v42_v15 = vmul.f32 %v73_v14, %v69_v9 }
 0x150   :  { %44 = vst [vmem:[#allocation5 + $0x8] sm:$0xff] %v42_v15 }
 0x151   :  { %107 = shalt.err (!%p104_p12)
}
 0x152   :  { %s108_s24 = scalar_lea.hbm %s167_s1, 256 }
 0x153   :  { %p109_p13 = scmp.ne.s32.totalorder %s167_s1, %s108_s24  ;;  %p112_p0 = scmp.lt.u32.totalorder %s108_s24, %s167_s1 }
 0x155   :  { %p114_p1 = pnand %p112_p0, %p109_p13 }
 0x157   :  { %117 = shalt.err (!%p114_p1)
}
 0x158   :  { %56 = dma.vmem_to_hbm [thread:$0]  %s51_s20, 256, %s167_s1, [#allocation4], %s123_s16, %s123_s16, %s124_s17  }
 0x159   :  { %120 = dma.done.wait [#allocation4], 256  }
 0x15a   :  { %121 = vsyncadd [#allocation4], 4294967040 }
 0x15b   :  { %60 = vsyncpa [#allocation3], 1 }
 0x15c   :  { %61 = vsyncpa [#allocation4], 1 }

</bundles_post_ra>
